<compile_context>
chip_gen: v7x
topology: tpu7x:2x2x1
jax: 0.10.0
libtpu: 0.0.40
codegen_flags: <defaults>
</compile_context>

<pallas_src>
import jax
import jax.numpy as jnp
from jax.experimental import pallas as pl
from jax.experimental.pallas import tpu as pltpu


def _round_up(x, m):
    return ((x + m - 1) // m) * m


def _cdiv(a, b):
    return (a + b - 1) // b


def _pretrain_kernel_f32out(x_ref, w_ref, b_ref, o_ref):
    # f32 output: accumulate directly in the resident output block (its
    # BlockSpec ignores k, so it stays in VMEM across the whole K loop).
    k = pl.program_id(2)

    @pl.when(k == 0)
    def _():
        o_ref[...] = jnp.zeros_like(o_ref)

    o_ref[...] += jnp.dot(x_ref[...], w_ref[...],
                          preferred_element_type=jnp.float32)

    @pl.when(k == pl.num_programs(2) - 1)
    def _():
        o_ref[...] = jax.nn.sigmoid(o_ref[...] + b_ref[...])


def _pretrain_kernel_acc(x_ref, w_ref, b_ref, o_ref, acc_ref):
    # Non-f32 output: f32 VMEM accumulator, cast at finalize.
    k = pl.program_id(2)

    @pl.when(k == 0)
    def _():
        acc_ref[...] = jnp.zeros_like(acc_ref)

    acc_ref[...] += jnp.dot(x_ref[...], w_ref[...],
                            preferred_element_type=jnp.float32)

    @pl.when(k == pl.num_programs(2) - 1)
    def _():
        y = acc_ref[...] + b_ref[...]
        o_ref[...] = jax.nn.sigmoid(y).astype(o_ref.dtype)


def init_linear_params(key, in_chanel, out_chanel):
    """Deterministic nn.Linear-style init: U(-1/sqrt(in), 1/sqrt(in)).

    Returns w in [in, out] (x @ w) layout and b [out], both f32.
    """
    kw, kb = jax.random.split(key)
    bound = 1.0 / jnp.sqrt(jnp.float32(in_chanel))
    w = jax.random.uniform(kw, (in_chanel, out_chanel), jnp.float32,
                           minval=-bound, maxval=bound)
    b = jax.random.uniform(kb, (out_chanel,), jnp.float32,
                           minval=-bound, maxval=bound)
    return w, b


def prepare_pretrain_params(w, b, *, mxu_dtype=jnp.bfloat16):
    """One-time parameter prep (do NOT redo per forward call).

    w: [K, N] f32 (PyTorch weight already transposed), b: [N] f32.
    Zero-pads K to a multiple of 128 and casts the weight to the MXU input
    dtype; bias stays f32 (it is added after the f32 accumulation).
    """
    K, N = w.shape
    Kp = _round_up(K, 128)
    wp = jnp.pad(w, ((0, Kp - K), (0, 0))).astype(mxu_dtype)
    bp = b.reshape(1, N).astype(jnp.float32)
    return wp, bp


def pretrain_forward(x, wp, bp, *, tm=512, tn=1024, tk=512, out_dtype=None):
    """sigmoid(x @ w + b) with params from prepare_pretrain_params.

    x: [M, K]; wp: [Kp, N] (Kp = K rounded up to 128, MXU input dtype);
    bp: [1, N] f32.  Returns [M, N] in out_dtype (default: x.dtype).
    """
    M, K = x.shape
    Kp, N = wp.shape
    assert bp.shape == (1, N)
    assert Kp % 128 == 0 and Kp >= K
    out_dtype = jnp.dtype(out_dtype or x.dtype)
    mxu_dtype = wp.dtype

    # Per-call prep touches only x: zero-pad K and cast to the MXU dtype.
    xp = x
    if Kp != K:
        xp = jnp.pad(xp, ((0, 0), (0, Kp - K)))
    if xp.dtype != mxu_dtype:
        xp = xp.astype(mxu_dtype)

    # --- tile selection -----------------------------------------------------
    # Sublane packing of the MXU input dtype: 8 rows (f32), 16 (bf16), 32 (8b).
    pack = 8 * (4 // jnp.dtype(mxu_dtype).itemsize)
    tm_e = min(tm, _round_up(M, pack))
    tn_e = min(tn, _round_up(N, 128))
    # The K tile must evenly divide Kp (a partial K block would feed stale
    # buffer contents into the reduction): pick the largest 128-multiple
    # divisor of Kp that is <= tk.
    q = Kp // 128
    tk_e = 128
    for d in range(min(max(tk, 128) // 128, q), 0, -1):
        if q % d == 0:
            tk_e = 128 * d
            break

    # Give v7x's second TensorCore a parallel block when the problem allows
    # (no effect on single-TC v5e/v6e).
    if _cdiv(M, tm_e) * _cdiv(N, tn_e) == 1:
        if tn_e >= 256 and (tn_e // 2) % 128 == 0:
            tn_e //= 2
        elif tm_e >= 2 * pack and (tm_e // 2) % pack == 0:
            tm_e //= 2

    grid = (_cdiv(M, tm_e), _cdiv(N, tn_e), Kp // tk_e)

    in_specs = [
        pl.BlockSpec((tm_e, tk_e), lambda i, j, k: (i, k)),   # x tile
        pl.BlockSpec((tk_e, tn_e), lambda i, j, k: (k, j)),   # w tile
        pl.BlockSpec((1, tn_e), lambda i, j, k: (0, j)),      # bias tile
    ]
    out_specs = pl.BlockSpec((tm_e, tn_e), lambda i, j, k: (i, j))

    if out_dtype == jnp.float32:
        kernel = _pretrain_kernel_f32out
        scratch_shapes = []
    else:
        kernel = _pretrain_kernel_acc
        scratch_shapes = [pltpu.VMEM((tm_e, tn_e), jnp.float32)]

    return pl.pallas_call(
        kernel,
        out_shape=jax.ShapeDtypeStruct((M, N), out_dtype),
        grid_spec=pltpu.PrefetchScalarGridSpec(
            num_scalar_prefetch=0,
            grid=grid,
            in_specs=in_specs,
            out_specs=out_specs,
            scratch_shapes=scratch_shapes,
        ),
        compiler_params=pltpu.CompilerParams(
            dimension_semantics=("parallel", "parallel", "arbitrary"),
            # v5e's default scoped-VMEM limit is 16 MiB; the double-buffered
            # working set of the large tiles plus Mosaic internal scratch can
            # trip it, so raise it explicitly (still <= every generation).
            vmem_limit_bytes=32 * 1024 * 1024,
        ),
    )(xp, wp, bp)


if __name__ == "__main__":
    in_chanel, out_chanel = 32, 64
    batch = 16

    key = jax.random.PRNGKey(0)
    kx, kp = jax.random.split(key)

    x = jax.random.normal(kx, (batch, in_chanel), jnp.float32)
    w, b = init_linear_params(kp, in_chanel, out_chanel)

    # One-time parameter prep: K-pad + bf16 cast + bias reshape.
    wp, bp = prepare_pretrain_params(w, b, mxu_dtype=jnp.bfloat16)

    out = pretrain_forward(x, wp, bp)
    out = jax.block_until_ready(out)

    # Sanity check against pure-JAX f32 reference (bf16 MXU inputs -> looser
    # tolerance than the pure-f32 variant; accumulation stays f32).
    ref = jax.nn.sigmoid(x @ w + b)
    assert out.shape == (batch, out_chanel)
    assert out.dtype == x.dtype
    assert jnp.allclose(out, ref, atol=2e-2, rtol=2e-2)

    print("KERNEL_OK")
</pallas_src>

<mosaic_0001>
module attributes {stable_mosaic.version = 11 : i64} {
  func.func @_pretrain_kernel_f32out(%arg0: i32, %arg1: i32, %arg2: i32, %arg3: memref<16x128xbf16, #tpu.memory_space<vmem>>, %arg4: memref<128x128xbf16, #tpu.memory_space<vmem>>, %arg5: memref<1x128xf32, #tpu.memory_space<vmem>>, %arg6: memref<16x128xf32, #tpu.memory_space<vmem>>) attributes {dimension_semantics = [#tpu.dimension_semantics<parallel>, #tpu.dimension_semantics<parallel>, #tpu.dimension_semantics<arbitrary>], iteration_bounds = array<i64: 1, 1, 1>, scalar_prefetch = 0 : i64, scratch_operands = 0 : i64, tpu.core_type = #tpu.core_type<tc>, window_params = [{transform_indices = @transform_0, window_bounds = array<i64: 16, 128>}, {transform_indices = @transform_1, window_bounds = array<i64: 128, 128>}, {transform_indices = @transform_2, window_bounds = array<i64: 1, 128>}, {transform_indices = @transform_3, window_bounds = array<i64: 16, 128>}]} {
    %c0_i32 = arith.constant 0 : i32
    %0 = arith.cmpi eq, %arg2, %c0_i32 : i32
    %1 = arith.extui %0 : i1 to i32
    %c0_i32_0 = arith.constant 0 : i32
    %2 = arith.cmpi ne, %1, %c0_i32_0 : i32
    scf.if %2 {
      %cst_10 = arith.constant 0.000000e+00 : f32
      %12 = vector.broadcast %cst_10 : f32 to vector<16x128xf32>
      %c0_11 = arith.constant 0 : index
      %c0_12 = arith.constant 0 : index
      %13 = vector.load %arg6[%c0_11, %c0_12] : memref<16x128xf32, #tpu.memory_space<vmem>>, vector<16x128xf32>
      tpu.vector_store %arg6[%c0_11, %c0_12], %12 {strides = array<i32>} : memref<16x128xf32, #tpu.memory_space<vmem>>, vector<16x128xf32>,
    } else {
    }
    %c0 = arith.constant 0 : index
    %c0_1 = arith.constant 0 : index
    %3 = vector.load %arg6[%c0, %c0_1] : memref<16x128xf32, #tpu.memory_space<vmem>>, vector<16x128xf32>
    %c0_2 = arith.constant 0 : index
    %c0_3 = arith.constant 0 : index
    %4 = vector.load %arg3[%c0_2, %c0_3] : memref<16x128xbf16, #tpu.memory_space<vmem>>, vector<16x128xbf16>
    %c0_4 = arith.constant 0 : index
    %c0_5 = arith.constant 0 : index
    %5 = vector.load %arg4[%c0_4, %c0_5] : memref<128x128xbf16, #tpu.memory_space<vmem>>, vector<128x128xbf16>
    %cst = arith.constant dense<0.000000e+00> : vector<16x128xf32>
    %6 = tpu.matmul %4, %5, %cst {dimension_numbers = #tpu.dot_dimension_numbers<[1], [0], [0], [1], [0, 0, 1, 1], [], []>} : vector<16x128xbf16>, vector<128x128xbf16>, vector<16x128xf32> -> vector<16x128xf32>
    %7 = arith.addf %3, %6 : vector<16x128xf32>
    %c0_6 = arith.constant 0 : index
    %c0_7 = arith.constant 0 : index
    %8 = vector.load %arg6[%c0_6, %c0_7] : memref<16x128xf32, #tpu.memory_space<vmem>>, vector<16x128xf32>
    tpu.vector_store %arg6[%c0_6, %c0_7], %7 {strides = array<i32>} : memref<16x128xf32, #tpu.memory_space<vmem>>, vector<16x128xf32>,
    %c0_i32_8 = arith.constant 0 : i32
    %9 = arith.cmpi eq, %arg2, %c0_i32_8 : i32
    %10 = arith.extui %9 : i1 to i32
    %c0_i32_9 = arith.constant 0 : i32
    %11 = arith.cmpi ne, %10, %c0_i32_9 : i32
    scf.if %11 {
      %c0_10 = arith.constant 0 : index
      %c0_11 = arith.constant 0 : index
      %12 = vector.load %arg6[%c0_10, %c0_11] : memref<16x128xf32, #tpu.memory_space<vmem>>, vector<16x128xf32>
      %c0_12 = arith.constant 0 : index
      %c0_13 = arith.constant 0 : index
      %13 = vector.load %arg5[%c0_12, %c0_13] : memref<1x128xf32, #tpu.memory_space<vmem>>, vector<1x128xf32>
      %14 = vector.broadcast %13 : vector<1x128xf32> to vector<16x128xf32>
      %15 = arith.addf %12, %14 : vector<16x128xf32>
      %16 = arith.negf %15 : vector<16x128xf32>
      %17 = math.exp %16 : vector<16x128xf32>
      %cst_14 = arith.constant 1.000000e+00 : f32
      %18 = vector.broadcast %cst_14 : f32 to vector<16x128xf32>
      %19 = arith.addf %18, %17 : vector<16x128xf32>
      %20 = arith.divf %18, %19 : vector<16x128xf32>
      %c0_15 = arith.constant 0 : index
      %c0_16 = arith.constant 0 : index
      %21 = vector.load %arg6[%c0_15, %c0_16] : memref<16x128xf32, #tpu.memory_space<vmem>>, vector<16x128xf32>
      tpu.vector_store %arg6[%c0_15, %c0_16], %20 {strides = array<i32>} : memref<16x128xf32, #tpu.memory_space<vmem>>, vector<16x128xf32>,
    } else {
    }
    return
  }
  func.func @transform_0(%arg0: i32, %arg1: i32, %arg2: i32) -> (i32, i32) {
    %c0_i32 = arith.constant 0 : i32
    return %arg0, %arg2 : i32, i32
  }
  func.func @transform_1(%arg0: i32, %arg1: i32, %arg2: i32) -> (i32, i32) {
    %c0_i32 = arith.constant 0 : i32
    return %arg2, %arg1 : i32, i32
  }
  func.func @transform_2(%arg0: i32, %arg1: i32, %arg2: i32) -> (i32, i32) {
    %c0_i32 = arith.constant 0 : i32
    %c0_i32_0 = arith.constant 0 : i32
    return %c0_i32, %arg1 : i32, i32
  }
  func.func @transform_3(%arg0: i32, %arg1: i32, %arg2: i32) -> (i32, i32) {
    %c0_i32 = arith.constant 0 : i32
    return %arg0, %arg1 : i32, i32
  }
}

</mosaic_0001>

<bundles_post_ra>
// kernel: tpu_custom_call.1
= control target key start
LH: loop header
LB: loop body
LE: loop exit
PB: predicated region body
PF: predicated region fallthrough
CT: control target
= control target key end

     0   :  { %v272_v1 = vmov 0.0   ;;  %vm273_vm0 = vmmov 0   ;;  %s339_s0 = inlined_call_operand.vmem [shape: bf16[16,128], index: 0, kind: input, shape index: {}]   ;;  %s340_s1 = inlined_call_operand.vmem [shape: bf16[128,64], index: 1, kind: input, shape index: {}]   ;;  %s341_s2 = inlined_call_operand.vmem [shape: f32[1,64], index: 2, kind: input, shape index: {}]   ;;  %s342_s3 = inlined_call_operand.hbm [shape: f32[16,64], index: 3, kind: output, shape index: {}]  }
   0x1   :  { %v231_v0 = vld [vmem:[%s340_s1] sm:$0xff]   ;;  %206 = vmatprep.subr.bf16.mxu0 %v272_v1  ;;  %v232_v2 = vld [vmem:[%s340_s1 + $0x8] sm:$0xff]   ;;  %222 = vmatprep.mubr.msk.bf16.mxu0 %vm273_vm0, %v272_v1  ;;  %v233_v3 = vld [vmem:[%s340_s1 + $0x10] sm:$0xff]  }
   0x2   :  { %207 = vmatpush3.bf16.msra.mxu0 %v231_v0 }
   0x3   :  { %208 = vmatprep.subr.bf16.mxu0 %v272_v1 }
   0x6   :  { %209 = vmatpush3.bf16.msra.mxu0 %v232_v2 }
   0x7   :  { %210 = vmatprep.subr.bf16.mxu0 %v272_v1 }
   0x8   :  { %8 = vsyncpa [#allocation3], 0  ;;  %v234_v4 = vld [vmem:[%s340_s1 + $0x18] sm:$0xff]   ;;  %v235_v5 = vld [vmem:[%s340_s1 + $0x20] sm:$0xff]  }
   0x9   :  { %v236_v6 = vld [vmem:[%s340_s1 + $0x28] sm:$0xff]   ;;  %v237_v7 = vld [vmem:[%s340_s1 + $0x30] sm:$0xff]   ;;  %v238_v8 = vld [vmem:[%s340_s1 + $0x38] sm:$0xff]  }
   0xa   :  { %211 = vmatpush3.bf16.msra.mxu0 %v233_v3  ;;  %v239_v9 = vld [vmem:[%s339_s0] sm:$0xff]   ;;  %s274_s0 = smov [#allocation2]  }
   0xb   :  { %212 = vmatprep.subr.bf16.mxu0 %v272_v1  ;;  %v194_v11 = vld [vmem:[%s341_s2] ss:$0 sm:$0xff]  ;;  %s174_s1 = sshll.u32 %s274_s0, 4  ;;  %s175_s1 = int_to_ptr.vmem [resolvable:$true] %s174_s1 }
   0xc   :  { %s248_s2 = scalar_lea.vmem %s175_s1, 256  ;;  %p253_p1 = scmp.lt.s32.totalorder %s175_s1, %s175_s1 }
   0xd   :  { %p249_p0 = scmp.ne.s32.totalorder %s175_s1, %s248_s2  ;;  %p254_p2 = scmp.lt.s32.totalorder %s248_s2, %s248_s2 }
   0xe   :  { %213 = vmatpush3.bf16.msra.mxu0 %v234_v4 }
   0xf   :  { %214 = vmatprep.subr.bf16.mxu0 %v272_v1  ;;  %p255_p3 = por %p254_p2, %p253_p1 }
  0x11   :  { %p256_p4 = pnand %p255_p3, %p249_p0 }
  0x12   :  { %215 = vmatpush3.bf16.msra.mxu0 %v235_v5 }
  0x13   :  { %216 = vmatprep.subr.bf16.mxu0 %v272_v1 }
  0x16   :  { %217 = vmatpush3.bf16.msra.mxu0 %v236_v6 }
  0x17   :  { %218 = vmatprep.subr.bf16.mxu0 %v272_v1 }
  0x1a   :  { %219 = vmatpush3.bf16.msra.mxu0 %v237_v7 }
  0x1b   :  { %220 = vmatprep.subr.bf16.mxu0 %v272_v1 }
  0x1e   :  { %221 = vmatpush3.bf16.msra.mxu0 %v238_v8 }
  0x21   :  { %223 = vmatmul.mubr.bf16.vlgmr.msra.gmra.mrb[0].mxu0 %v239_v9 }
  0xf4   :  { %v130_v10 = vpop.f32.mrb[0].mxu0 }
  0xf5   :  { %v224_v12 = vpop.f32.mrb[1].mxu0  ;;  %v153_v14 = vadd.f32 %v194_v11, %v130_v10 }
  0xf6   :  { %v133_v13 = vpop.f32.mrb[2].mxu0 }
  0xf7   :  { %v225_v15 = vpop.f32.mrb[3].mxu0  ;;  %v195_v16 = vmul.f32 -1.442695, %v153_v14  ;;  %v154_v17 = vadd.f32 %v194_v11, %v133_v13 }
  0xf9   :  { %240 = vpow2.f32 %v195_v16  ;;  %v196_v18 = vmul.f32 -1.442695, %v154_v17 }
  0xfb   :  { %242 = vpow2.f32 %v196_v18 }
 0x103   :  { %v241_v19 = vpop.eup %240 }
 0x104   :  { %v161_v20 = vadd.f32 1.0, %v241_v19 }
 0x105   :  { %v243_v21 = vpop.eup %242 }
 0x106   :  { %244 = vrcp.f32 %v161_v20  ;;  %v162_v22 = vadd.f32 1.0, %v243_v21 }
 0x108   :  { %246 = vrcp.f32 %v162_v22 }
 0x110   :  { %v245_v23 = vpop.eup %244 }
 0x111   :  { %167 = vst [vmem:[#allocation2] sm:$0xff] %v245_v23 }
 0x112   :  { %v247_v24 = vpop.eup %246 }
 0x113   :  { %168 = vst [vmem:[#allocation2 + $0x8] sm:$0xff] %v247_v24 }
 0x114   :  { %259 = shalt.err (!%p256_p4)
}
 0x115   :  { %s260_s7 = scalar_lea.hbm %s342_s3, 256 }
 0x116   :  { %p261_p5 = scmp.ne.s32.totalorder %s342_s3, %s260_s7  ;;  %p264_p6 = scmp.lt.u32.totalorder %s260_s7, %s342_s3 }
 0x118   :  { %p266_p7 = pnand %p264_p6, %p261_p5 }
 0x11a   :  { %269 = shalt.err (!%p266_p7)
}
 0x11b   :  { %s275_s12 = smov 128   ;;  %s276_s13 = smov 8  }
 0x11c   :  { %180 = dma.vmem_to_hbm [thread:$0]  %s175_s1, 256, %s342_s3, [#allocation3], %s275_s12, %s275_s12, %s276_s13  }
 0x11d   :  { %270 = dma.done.wait [#allocation3], 256  }
 0x11e   :  { %271 = vsyncadd [#allocation3], 4294967040 }
 0x11f   :  { %184 = vsyncpa [#allocation3], 1 }

</bundles_post_ra>
